<compile_context>
chip_gen: v5e
topology: v5e:2x2
jax: 0.10.0
libtpu: 0.0.40
codegen_flags: <defaults>
</compile_context>

<pallas_src>
import functools

import jax
import jax.numpy as jnp
from jax.experimental import pallas as pl
from jax.experimental.pallas import tpu as pltpu

_MIB = 1024 * 1024
_MAX_TILE_HW = 32768     # lanes; bounds the unrolled sub-chunk loop (<= 64 iters)
_MIN_TILE_HW = 512       # never go below 512 lanes per grid step


def _detect_tpu():
    """Best-effort (physical VMEM bytes, tensorcores per chip), safe defaults."""
    vmem = 64 * _MIB          # v7x worst case
    cores = 1
    try:
        info = pltpu.get_tpu_info()
        v = getattr(info, "vmem_capacity_bytes", None)
        if v:
            vmem = int(v)
        for name in ("num_cores", "core_count", "num_tensorcores",
                     "tensorcore_count", "cores_per_chip"):
            c = getattr(info, name, None)
            if isinstance(c, int) and c > 0:
                cores = c
                break
    except Exception:
        pass
    if cores == 1:
        try:
            if "v7" in jax.devices()[0].device_kind.lower():
                cores = 2
        except Exception:
            pass
    vmem = max(16 * _MIB, min(vmem, 128 * _MIB))
    return vmem, cores


def _dice_partial_kernel(x_ref, y_ref, tp_ref, s_ref, acc_tp, acc_s, *,
                         hw, tile_hw, acc_w, n_sub, tail, num_tiles,
                         tiles_per_chunk, need_mask):
    """Accumulate per-row partials tp = sum(x*y) and s = sum(x) + sum(y)."""
    t = pl.program_id(2)           # reduction step within this chunk ("arbitrary")

    @pl.when(t == 0)
    def _zero():
        acc_tp[...] = jnp.zeros_like(acc_tp)
        acc_s[...] = jnp.zeros_like(acc_s)

    def tile_partials(tile_start, masked):
        # Register-resident partial accumulation: one VMEM read-modify-write of
        # the (block_rows, acc_w) accumulator per tile instead of per vreg pair.
        def load(s):
            xs = x_ref[:, pl.ds(s * acc_w, acc_w)].astype(jnp.float32)
            ys = y_ref[:, pl.ds(s * acc_w, acc_w)].astype(jnp.float32)
            if masked:
                # Mask BEFORE any arithmetic so stale/garbage lanes in ragged
                # edge blocks (possibly NaN bit patterns) cannot propagate.
                lane = jax.lax.broadcasted_iota(jnp.int32, xs.shape, 1)
                valid = (tile_start + s * acc_w + lane) < hw
                xs = jnp.where(valid, xs, 0.0)
                ys = jnp.where(valid, ys, 0.0)
            return xs, ys

        xs, ys = load(0)
        p_tp = xs * ys
        p_s = xs + ys
        for s in range(1, n_sub):
            xs, ys = load(s)
            p_tp += xs * ys
            p_s += xs + ys
        return p_tp, p_s

    if n_sub > 0:
        if need_mask:
            # Raggedness only exists at the very end of the logical tile range;
            # keep the mask off the steady-state path.
            logical_tile = pl.program_id(0) * tiles_per_chunk + t
            last_tile = num_tiles - 1

            @pl.when(logical_tile < last_tile)
            def _acc_full():
                p_tp, p_s = tile_partials(0, False)
                acc_tp[...] += p_tp
                acc_s[...] += p_s

            @pl.when(logical_tile >= last_tile)
            def _acc_edge():
                p_tp, p_s = tile_partials(logical_tile * tile_hw, True)
                acc_tp[...] += p_tp
                acc_s[...] += p_s
        else:
            p_tp, p_s = tile_partials(0, False)
            acc_tp[...] += p_tp
            acc_s[...] += p_s

    # Ragged tail within a single full-extent tile (only when num_tiles == 1
    # and hw % acc_w != 0): reduce it straight to a (rows, 1) column.
    if tail > 0:
        xt = x_ref[:, pl.ds(n_sub * acc_w, tail)].astype(jnp.float32)
        yt = y_ref[:, pl.ds(n_sub * acc_w, tail)].astype(jnp.float32)
        tail_tp = jnp.sum(xt * yt, axis=1, keepdims=True)
        tail_s = jnp.sum(xt + yt, axis=1, keepdims=True)
    else:
        tail_tp = 0.0
        tail_s = 0.0

    @pl.when(t == tiles_per_chunk - 1)
    def _finalize():
        # One cross-lane (XLU) reduce per (chunk, row-block).
        tp_ref[0] = jnp.sum(acc_tp[...], axis=1, keepdims=True) + tail_tp
        s_ref[0] = jnp.sum(acc_s[...], axis=1, keepdims=True) + tail_s


def soft_dice_loss(x, y_onehot, smooth=1.0):
    """x, y_onehot: (b, c, h, w) arrays (y_onehot already one-hot); f32 or bf16."""
    b, c, h, w = x.shape
    rows = b * c
    hw = h * w
    x2 = x.reshape(rows, hw)
    y2 = y_onehot.reshape(rows, hw)

    vmem_cap, n_cores = _detect_tpu()

    # --- row (sublane) blocking: 8-aligned blocks, bounded vreg pressure -----
    block_rows = rows
    if rows > 64:
        for cand in (64, 56, 48, 40, 32, 24, 16, 8):
            if rows % cand == 0:
                block_rows = cand
                break
    n_row_blocks = rows // block_rows
    # TODO(synk): rows not a multiple of 8 fall back to a full-extent row block
    # (correct, but wastes sublanes); padding rows to 8 would recover them.

    # Accumulator width: large enough to amortize the per-tile VMEM RMW, small
    # enough that the two register partials stay comfortably in vregs.
    acc_w = 512 if block_rows <= 16 else (256 if block_rows <= 32 else 128)

    # --- spatial tile: VMEM-budget driven, multiple of 512 lanes -------------
    in_itemsize = x2.dtype.itemsize + y2.dtype.itemsize
    pipe_budget = max(4 * _MIB, vmem_cap // 2)          # in-flight input blocks
    acc_bytes = 2 * block_rows * acc_w * 4
    bytes_per_lane = 2 * block_rows * in_itemsize       # 2 = double buffering
    budget_lanes = max(_MIN_TILE_HW,
                       (pipe_budget - acc_bytes) // max(1, bytes_per_lane))
    tile_hw = max(_MIN_TILE_HW, min(_MAX_TILE_HW, (budget_lanes // 512) * 512))
    if hw <= tile_hw:
        tile_hw = hw                  # full-extent block (always legal)
    num_tiles = pl.cdiv(hw, tile_hw)
    n_sub = tile_hw // acc_w
    tail = tile_hw % acc_w            # nonzero only in the single-tile case

    # --- chunk the tile range across TensorCores only on 2-TC chips ----------
    n_par = 2 if (n_cores >= 2 and num_tiles >= 2) else 1

    # --- VMEM limit derived from the real double-buffered footprint ----------
    in_block_bytes = block_rows * tile_hw * in_itemsize
    footprint = 2 * in_block_bytes + acc_bytes + 2 * 2 * block_rows * 4
    vmem_limit = int(min(vmem_cap, max(32 * _MIB, footprint + footprint // 2 + _MIB)))

    cost = pl.CostEstimate(
        flops=int(4 * rows * hw),
        transcendentals=0,
        bytes_accessed=int(x2.size * x2.dtype.itemsize
                           + y2.size * y2.dtype.itemsize
                           + 2 * 4 * n_par * rows))

    def run(n_par_, core_parallel):
        tiles_per_chunk = pl.cdiv(num_tiles, n_par_)
        clamp = n_par_ * tiles_per_chunk > num_tiles       # phantom tail tile
        need_mask = (hw % tile_hw != 0) or clamp

        kernel = functools.partial(
            _dice_partial_kernel, hw=hw, tile_hw=tile_hw, acc_w=acc_w,
            n_sub=n_sub, tail=tail, num_tiles=num_tiles,
            tiles_per_chunk=tiles_per_chunk, need_mask=need_mask)

        def in_map(p, r, t):
            tile = p * tiles_per_chunk + t
            if clamp:
                # Phantom step refetches the last real block; fully masked to 0.
                tile = jnp.minimum(tile, num_tiles - 1)
            return (r, tile)

        def out_map(p, r, t):
            return (p, r, 0)

        if core_parallel:
            sems = (pltpu.CORE_PARALLEL, pltpu.PARALLEL, pltpu.ARBITRARY)
        else:
            sems = ("parallel", "parallel", "arbitrary")

        return pl.pallas_call(
            kernel,
            out_shape=(jax.ShapeDtypeStruct((n_par_, rows, 1), jnp.float32),
                       jax.ShapeDtypeStruct((n_par_, rows, 1), jnp.float32)),
            grid_spec=pltpu.PrefetchScalarGridSpec(
                num_scalar_prefetch=0,
                grid=(n_par_, n_row_blocks, tiles_per_chunk),
                in_specs=[pl.BlockSpec((block_rows, tile_hw), in_map),
                          pl.BlockSpec((block_rows, tile_hw), in_map)],
                out_specs=[pl.BlockSpec((1, block_rows, 1), out_map),
                           pl.BlockSpec((1, block_rows, 1), out_map)],
                scratch_shapes=[pltpu.VMEM((block_rows, acc_w), jnp.float32),
                                pltpu.VMEM((block_rows, acc_w), jnp.float32)]),
            compiler_params=pltpu.CompilerParams(
                dimension_semantics=sems, vmem_limit_bytes=vmem_limit),
            cost_estimate=cost,
        )(x2, y2)

    if n_par == 2:
        try:
            tp_parts, s_parts = run(2, True)
        except Exception:
            # CORE_PARALLEL not supported on this chip/backend -> serial chunk.
            tp_parts, s_parts = run(1, False)
    else:
        tp_parts, s_parts = run(1, False)

    # Tiny finalize on (b*c,) values: combine chunk partials, dice ratio, mean.
    tp = jnp.sum(tp_parts[:, :, 0], axis=0)       # sum_hw x*y          per (b, c)
    s = jnp.sum(s_parts[:, :, 0], axis=0)         # sum_hw x + sum_hw y per (b, c)
    dc = (2.0 * tp + smooth) / (s + smooth)       # since fp + fn = s - 2*tp
    return -jnp.mean(dc)                          # do_bg=True, batch_dice=False


def soft_dice_loss_ref(x, y_onehot, smooth=1.0):
    """Pure-JAX reference mirroring the PyTorch module (default config)."""
    tp = jnp.sum(x * y_onehot, axis=(2, 3))
    fp = jnp.sum(x * (1.0 - y_onehot), axis=(2, 3))
    fn = jnp.sum((1.0 - x) * y_onehot, axis=(2, 3))
    dc = (2.0 * tp + smooth) / (2.0 * tp + fp + fn + smooth)
    return -jnp.mean(dc)


def _make_inputs(key, b, c, h, w):
    kx, ky = jax.random.split(key)
    logits = jax.random.normal(kx, (b, c, h, w), dtype=jnp.float32)
    x = jax.nn.softmax(logits, axis=1)                       # "net output"
    labels = jax.random.randint(ky, (b, h, w), 0, c)         # label map
    y_onehot = jnp.transpose(
        jax.nn.one_hot(labels, c, dtype=jnp.float32), (0, 3, 1, 2))
    return x, y_onehot


if __name__ == "__main__":
    test_shapes = [
        (2, 4, 16, 16),     # canonical small shape: single tile, tail-only path
        (2, 4, 88, 88),     # single full-extent tile + ragged 64-lane tail
        (2, 4, 250, 320),   # multi-tile reduction + last-tile mask (+ core split on 2-TC chips)
        (4, 32, 48, 48),    # rows = 128 -> row blocking (block_rows = 64)
    ]
    key = jax.random.PRNGKey(0)
    for (b, c, h, w) in test_shapes:
        key, sub = jax.random.split(key)
        x, y_onehot = _make_inputs(sub, b, c, h, w)
        loss = jax.block_until_ready(soft_dice_loss(x, y_onehot, smooth=1.0))
        ref = soft_dice_loss_ref(x, y_onehot, smooth=1.0)
        assert jnp.allclose(loss, ref, atol=1e-5, rtol=1e-4), (b, c, h, w, loss, ref)
    print("KERNEL_OK")
</pallas_src>

<mosaic_0001>
module attributes {stable_mosaic.version = 11 : i64} {
  func.func @_dice_partial_kernel(%arg0: i32, %arg1: i32, %arg2: i32, %arg3: memref<8x256xf32, #tpu.memory_space<vmem>>, %arg4: memref<8x256xf32, #tpu.memory_space<vmem>>, %arg5: memref<1x8x1xf32, #tpu.memory_space<vmem>>, %arg6: memref<1x8x1xf32, #tpu.memory_space<vmem>>, %arg7: memref<8x512xf32, #tpu.memory_space<vmem>>, %arg8: memref<8x512xf32, #tpu.memory_space<vmem>>) attributes {dimension_semantics = [#tpu.dimension_semantics<parallel>, #tpu.dimension_semantics<parallel>, #tpu.dimension_semantics<arbitrary>], iteration_bounds = array<i64: 1, 1, 1>, scalar_prefetch = 0 : i64, scratch_operands = 2 : i64, tpu.core_type = #tpu.core_type<tc>, window_params = [{transform_indices = @transform_0, window_bounds = array<i64: 8, 256>}, {transform_indices = @transform_1, window_bounds = array<i64: 8, 256>}, {transform_indices = @transform_2, window_bounds = array<i64: 1, 8, 1>}, {transform_indices = @transform_3, window_bounds = array<i64: 1, 8, 1>}]} {
    %c0_i32 = arith.constant 0 : i32
    %0 = arith.cmpi eq, %arg2, %c0_i32 : i32
    %1 = arith.extui %0 : i1 to i32
    %c0_i32_0 = arith.constant 0 : i32
    %2 = arith.cmpi ne, %1, %c0_i32_0 : i32
    scf.if %2 {
      %cst_7 = arith.constant 0.000000e+00 : f32
      %14 = vector.broadcast %cst_7 : f32 to vector<8x512xf32>
      %c0_8 = arith.constant 0 : index
      %c0_9 = arith.constant 0 : index
      %15 = vector.load %arg7[%c0_8, %c0_9] : memref<8x512xf32, #tpu.memory_space<vmem>>, vector<8x512xf32>
      tpu.vector_store %arg7[%c0_8, %c0_9], %14 {strides = array<i32>} : memref<8x512xf32, #tpu.memory_space<vmem>>, vector<8x512xf32>,
      %cst_10 = arith.constant 0.000000e+00 : f32
      %16 = vector.broadcast %cst_10 : f32 to vector<8x512xf32>
      %c0_11 = arith.constant 0 : index
      %c0_12 = arith.constant 0 : index
      %17 = vector.load %arg8[%c0_11, %c0_12] : memref<8x512xf32, #tpu.memory_space<vmem>>, vector<8x512xf32>
      tpu.vector_store %arg8[%c0_11, %c0_12], %16 {strides = array<i32>} : memref<8x512xf32, #tpu.memory_space<vmem>>, vector<8x512xf32>,
    } else {
    }
    %c0 = arith.constant 0 : index
    %c0_1 = arith.constant 0 : index
    %3 = vector.load %arg3[%c0, %c0_1] : memref<8x256xf32, #tpu.memory_space<vmem>>, vector<8x256xf32>
    %c0_2 = arith.constant 0 : index
    %c0_3 = arith.constant 0 : index
    %4 = vector.load %arg4[%c0_2, %c0_3] : memref<8x256xf32, #tpu.memory_space<vmem>>, vector<8x256xf32>
    %5 = arith.mulf %3, %4 : vector<8x256xf32>
    %cst = arith.constant dense<0.000000e+00> : vector<8xf32>
    %6 = vector.multi_reduction <add>, %5, %cst [1] : vector<8x256xf32> to vector<8xf32>
    %7 = vector.shape_cast %6 : vector<8xf32> to vector<8x1xf32>
    %8 = arith.addf %3, %4 : vector<8x256xf32>
    %cst_4 = arith.constant dense<0.000000e+00> : vector<8xf32>
    %9 = vector.multi_reduction <add>, %8, %cst_4 [1] : vector<8x256xf32> to vector<8xf32>
    %10 = vector.shape_cast %9 : vector<8xf32> to vector<8x1xf32>
    %c0_i32_5 = arith.constant 0 : i32
    %11 = arith.cmpi eq, %arg2, %c0_i32_5 : i32
    %12 = arith.extui %11 : i1 to i32
    %c0_i32_6 = arith.constant 0 : i32
    %13 = arith.cmpi ne, %12, %c0_i32_6 : i32
    scf.if %13 {
      %c0_7 = arith.constant 0 : index
      %c0_8 = arith.constant 0 : index
      %14 = vector.load %arg7[%c0_7, %c0_8] : memref<8x512xf32, #tpu.memory_space<vmem>>, vector<8x512xf32>
      %cst_9 = arith.constant dense<0.000000e+00> : vector<8xf32>
      %15 = vector.multi_reduction <add>, %14, %cst_9 [1] : vector<8x512xf32> to vector<8xf32>
      %16 = vector.shape_cast %15 : vector<8xf32> to vector<8x1xf32>
      %17 = arith.addf %16, %7 : vector<8x1xf32>
      %c0_10 = arith.constant 0 : index
      %c0_11 = arith.constant 0 : index
      %c0_12 = arith.constant 0 : index
      %18 = vector.load %arg5[%c0_10, %c0_11, %c0_12] : memref<1x8x1xf32, #tpu.memory_space<vmem>>, vector<1x8x1xf32>
      %19 = vector.shape_cast %18 : vector<1x8x1xf32> to vector<8x1xf32>
      %20 = vector.shape_cast %17 : vector<8x1xf32> to vector<1x8x1xf32>
      tpu.vector_store %arg5[%c0_10, %c0_11, %c0_12], %20 {strides = array<i32>} : memref<1x8x1xf32, #tpu.memory_space<vmem>>, vector<1x8x1xf32>,
      %c0_13 = arith.constant 0 : index
      %c0_14 = arith.constant 0 : index
      %21 = vector.load %arg8[%c0_13, %c0_14] : memref<8x512xf32, #tpu.memory_space<vmem>>, vector<8x512xf32>
      %cst_15 = arith.constant dense<0.000000e+00> : vector<8xf32>
      %22 = vector.multi_reduction <add>, %21, %cst_15 [1] : vector<8x512xf32> to vector<8xf32>
      %23 = vector.shape_cast %22 : vector<8xf32> to vector<8x1xf32>
      %24 = arith.addf %23, %10 : vector<8x1xf32>
      %c0_16 = arith.constant 0 : index
      %c0_17 = arith.constant 0 : index
      %c0_18 = arith.constant 0 : index
      %25 = vector.load %arg6[%c0_16, %c0_17, %c0_18] : memref<1x8x1xf32, #tpu.memory_space<vmem>>, vector<1x8x1xf32>
      %26 = vector.shape_cast %25 : vector<1x8x1xf32> to vector<8x1xf32>
      %27 = vector.shape_cast %24 : vector<8x1xf32> to vector<1x8x1xf32>
      tpu.vector_store %arg6[%c0_16, %c0_17, %c0_18], %27 {strides = array<i32>} : memref<1x8x1xf32, #tpu.memory_space<vmem>>, vector<1x8x1xf32>,
    } else {
    }
    return
  }
  func.func @transform_0(%arg0: i32, %arg1: i32, %arg2: i32) -> (i32, i32) {
    %c1_i32 = arith.constant 1 : i32
    %0 = arith.muli %arg0, %c1_i32 : i32
    %1 = arith.addi %0, %arg2 : i32
    %c0_i32 = arith.constant 0 : i32
    return %arg1, %1 : i32, i32
  }
  func.func @transform_1(%arg0: i32, %arg1: i32, %arg2: i32) -> (i32, i32) {
    %c1_i32 = arith.constant 1 : i32
    %0 = arith.muli %arg0, %c1_i32 : i32
    %1 = arith.addi %0, %arg2 : i32
    %c0_i32 = arith.constant 0 : i32
    return %arg1, %1 : i32, i32
  }
  func.func @transform_2(%arg0: i32, %arg1: i32, %arg2: i32) -> (i32, i32, i32) {
    %c0_i32 = arith.constant 0 : i32
    %c0_i32_0 = arith.constant 0 : i32
    return %arg0, %arg1, %c0_i32 : i32, i32, i32
  }
  func.func @transform_3(%arg0: i32, %arg1: i32, %arg2: i32) -> (i32, i32, i32) {
    %c0_i32 = arith.constant 0 : i32
    %c0_i32_0 = arith.constant 0 : i32
    return %arg0, %arg1, %c0_i32 : i32, i32, i32
  }
}

</mosaic_0001>

<bundles_post_ra>
// kernel: tpu_custom_call.1
= control target key start
LH: loop header
LB: loop body
LE: loop exit
PB: predicated region body
PF: predicated region fallthrough
CT: control target
= control target key end

     0   :  { %9 = vsyncpa [#allocation5], 0  ;;  %s205_s0 = inlined_call_operand.hbm [shape: f32[8,256], index: 0, kind: input, shape index: {}]   ;;  %s206_s1 = inlined_call_operand.hbm [shape: f32[8,256], index: 1, kind: input, shape index: {}]   ;;  %s207_s2 = inlined_call_operand.vmem [shape: f32[1,8,1], index: 2, kind: output, shape index: {0}]   ;;  %s208_s3 = inlined_call_operand.vmem [shape: f32[1,8,1], index: 3, kind: output, shape index: {1}]  }
   0x1   :  { %s20_s14 = sshll.u32 %s205_s0, 4  ;;  %s21_s14 = int_to_ptr.hbm [resolvable:$true] %s20_s14 }
   0x2   :  { %10 = vsyncpa [#allocation7], 0  ;;  %s170_s15 = smov [#allocation4]   ;;  %s35_s19 = sshll.u32 %s206_s1, 4  ;;  %s36_s19 = int_to_ptr.hbm [resolvable:$true] %s35_s19 }
   0x3   :  { %s22_s16 = sshll.u32 %s170_s15, 4  ;;  %s171_s20 = smov [#allocation6]   ;;  %s23_s16 = int_to_ptr.vmem [resolvable:$true] %s22_s16 }
   0x4   :  { %25 = dma.hbm_to_vmem [thread:$0]  %s21_s14, 256, %s23_s16, [#allocation5]  }
   0x5   :  { %s37_s21 = sshll.u32 %s171_s20, 4  ;;  %s38_s21 = int_to_ptr.vmem [resolvable:$true] %s37_s21 }
   0x6   :  { %40 = dma.hbm_to_vmem [thread:$0]  %s36_s19, 256, %s38_s21, [#allocation7]  }
   0x7   :  { %166 = dma.done.wait [#allocation5], 256  }
   0x8   :  { %167 = vsyncadd [#allocation5], 4294967040 }
   0x9   :  { %168 = dma.done.wait [#allocation7], 256  }
   0xa   :  { %169 = vsyncadd [#allocation7], 4294967040  ;;  %v172_v0 = vmov 0.0   ;;  %v65_v1 = vld [vmem:[#allocation4] sm:$0xff]  ;;  %v66_v2 = vld [vmem:[#allocation4 + $0x8] sm:$0xff]  ;;  %vm92_vm0 = vcmask 7168  }
   0xb   :  { %89 = vadd.xlane.f32.xlu1 %v172_v0  ;;  %v67_v3 = vld [vmem:[#allocation6] sm:$0xff]  ;;  %v68_v4 = vld [vmem:[#allocation6 + $0x8] sm:$0xff] }
   0xc   :  { %v69_v5 = vmul.f32 %v67_v3, %v65_v1  ;;  %v70_v6 = vmul.f32 %v68_v4, %v66_v2  ;;  %v74_v8 = vadd.f32 %v67_v3, %v65_v1  ;;  %v75_v9 = vadd.f32 %v68_v4, %v66_v2 }
   0xe   :  { %v71_v7 = vadd.f32 %v70_v6, %v69_v5  ;;  %v76_v10 = vadd.f32 %v75_v9, %v74_v8 }
  0x10   :  { %72 = vadd.xlane.f32.xlu0 %v71_v7 }
  0x13   :  { %101 = vadd.xlane.f32.xlu1 %v172_v0 }
  0x18   :  { %77 = vadd.xlane.f32.xlu0 %v76_v10 }
  0x7e   :  { %v90_v11 = vpop.xlane.xlu1 %89 }
  0x83   :  { %v73_v12 = vpop.xlane.xlu0 %72 }
  0x84   :  { %v91_v13 = vadd.f32 %v90_v11, %v73_v12 }
  0x86   :  { %93 = vst.msk [vmem:[%s207_s2] sm:$0xff] %vm92_vm0, %v91_v13  ;;  %v102_v14 = vpop.xlane.xlu1 %101 }
  0x8b   :  { %v78_v15 = vpop.xlane.xlu0 %77 }
  0x8c   :  { %v103_v16 = vadd.f32 %v102_v14, %v78_v15 }
  0x8e   :  { %104 = vst.msk [vmem:[%s208_s3] sm:$0xff] %vm92_vm0, %v103_v16 }
  0x8f   :  { %113 = vsyncpa [#allocation5], 1 }
  0x90   :  { %114 = vsyncpa [#allocation7], 1 }

</bundles_post_ra>
